<compile_context>
chip_gen: v6e
topology: v6e:2x2x1
jax: 0.10.0
libtpu: 0.0.40
codegen_flags: <defaults>
</compile_context>

<pallas_src>
import jax
import jax.numpy as jnp
from jax.experimental import pallas as pl
from jax.experimental.pallas import tpu as pltpu


def _q_net_kernel(x_ref, w1_ref, b1_ref, w2_ref, b2_ref, out_ref):
    # Layer 1: Linear(state_s -> 32) + ReLU   (MXU matmul, f32 accumulate)
    h = jnp.dot(x_ref[...], w1_ref[...], preferred_element_type=jnp.float32)
    h = jnp.maximum(h + b1_ref[...], 0.0)
    # Layer 3: Linear(32 -> action_s) + ReLU  (unpadded, lane-sparse store is
    # fine: the kernel is HBM-write-bound, not store-slot-bound)
    o = jnp.dot(h, w2_ref[...], preferred_element_type=jnp.float32)
    out_ref[...] = jnp.maximum(o + b2_ref[...], 0.0).astype(out_ref.dtype)


def _round_up(n, m):
    return ((n + m - 1) // m) * m


# Keep the double-buffered activation tiles comfortably inside every
# generation's scoped-VMEM budget (we request 32 MiB below).
_VMEM_TILE_BUDGET_BYTES = 24 << 20


def q_network_forward(x, w1, b1, w2, b2, *, block_m=8192, min_grid_steps=4):
    """x: [B, state_s] f32; w1: [state_s, H]; b1: [1, H]; w2: [H, A]; b2: [1, A].

    Returns [B, A] f32.  Batch is tiled with ~block_m-row blocks (streamed
    HBM<->VMEM); weights/biases stay VMEM-resident; the output is written
    unpadded ([*, A]) so there is no write amplification.
    """
    B, state_s = x.shape
    hidden = w1.shape[1]
    action_s = w2.shape[1]
    b1 = b1.reshape(1, hidden)
    b2 = b2.reshape(1, action_s)

    # ---- batch tile selection -------------------------------------------------
    # (a) multiple of 8 (sublane granularity)
    # (b) at least min_grid_steps grid steps when the batch allows it, so the
    #     "parallel" axis can be split across v7x's two TensorCores
    # (c) capped by a VMEM budget: in VMEM each activation row is lane-padded
    #     to 128 lanes and double-buffered.
    b8 = _round_up(B, 8)
    tm_steps = max(8, _round_up(pl.cdiv(b8, min_grid_steps), 8))
    bytes_per_row = 2 * 4 * (_round_up(state_s, 128) + _round_up(action_s, 128))
    tm_vmem = max(8, ((_VMEM_TILE_BUDGET_BYTES // bytes_per_row) // 8) * 8)
    tm = min(_round_up(block_m, 8), tm_steps, tm_vmem)

    b_pad = _round_up(B, tm)
    if b_pad != B:
        x = jnp.pad(x, ((0, b_pad - B), (0, 0)))
    grid = (b_pad // tm,)

    flops = 2 * b_pad * (state_s * hidden + hidden * action_s)
    bytes_accessed = 4 * (
        b_pad * (state_s + action_s)                    # activation stream (unpadded)
        + state_s * hidden + hidden                     # layer-1 params
        + hidden * action_s + action_s                  # layer-3 params
    )

    out = pl.pallas_call(
        _q_net_kernel,
        out_shape=jax.ShapeDtypeStruct((b_pad, action_s), jnp.float32),
        grid=grid,
        in_specs=[
            pl.BlockSpec((tm, state_s), lambda i: (i, 0)),       # x: streamed over batch
            pl.BlockSpec((state_s, hidden), lambda i: (0, 0)),   # w1: VMEM-resident
            pl.BlockSpec((1, hidden), lambda i: (0, 0)),         # b1: VMEM-resident
            pl.BlockSpec((hidden, action_s), lambda i: (0, 0)),  # w2: VMEM-resident
            pl.BlockSpec((1, action_s), lambda i: (0, 0)),       # b2: VMEM-resident
        ],
        out_specs=pl.BlockSpec((tm, action_s), lambda i: (i, 0)),
        compiler_params=pltpu.CompilerParams(
            dimension_semantics=("parallel",),          # v7x: shard batch tiles over 2 TCs
            vmem_limit_bytes=32 * 1024 * 1024,          # raise v5e's 16 MiB default
        ),
        cost_estimate=pl.CostEstimate(
            flops=flops, transcendentals=0, bytes_accessed=bytes_accessed),
    )(x, w1, b1, w2, b2)

    # Only the batch pad (if any) needs stripping; output is already unpadded.
    return out if b_pad == B else out[:B]


def init_params(key, state_s, hidden, action_s):
    """Deterministic init mimicking nn.Linear's U(-1/sqrt(fan_in), 1/sqrt(fan_in))."""
    k1, k2, k3, k4 = jax.random.split(key, 4)
    lim1 = 1.0 / jnp.sqrt(jnp.float32(state_s))
    lim2 = 1.0 / jnp.sqrt(jnp.float32(hidden))
    w1 = jax.random.uniform(k1, (state_s, hidden), jnp.float32, -lim1, lim1)
    b1 = jax.random.uniform(k2, (1, hidden), jnp.float32, -lim1, lim1)
    w2 = jax.random.uniform(k3, (hidden, action_s), jnp.float32, -lim2, lim2)
    b2 = jax.random.uniform(k4, (1, action_s), jnp.float32, -lim2, lim2)
    return w1, b1, w2, b2


def _reference(x, w1, b1, w2, b2):
    return jnp.maximum(jnp.maximum(x @ w1 + b1, 0.0) @ w2 + b2, 0.0)


if __name__ == "__main__":
    state_s, hidden, action_s = 16, 32, 4

    key = jax.random.PRNGKey(0)
    kx, kp, kx2 = jax.random.split(key, 3)
    w1, b1, w2, b2 = init_params(kp, state_s, hidden, action_s)

    # Small batch (single grid step).
    batch = 8
    x = jax.random.normal(kx, (batch, state_s), jnp.float32)
    out = q_network_forward(x, w1, b1, w2, b2)
    jax.block_until_ready(out)
    ref = _reference(x, w1, b1, w2, b2)
    assert out.shape == (batch, action_s)
    assert jnp.allclose(out, ref, atol=1e-5, rtol=1e-5)

    # Ragged batch exercising the multi-step grid + batch-padding path.
    batch2 = 300
    x2 = jax.random.normal(kx2, (batch2, state_s), jnp.float32)
    out2 = q_network_forward(x2, w1, b1, w2, b2, block_m=128)
    jax.block_until_ready(out2)
    ref2 = _reference(x2, w1, b1, w2, b2)
    assert out2.shape == (batch2, action_s)
    assert jnp.allclose(out2, ref2, atol=1e-5, rtol=1e-5)

    print("KERNEL_OK")
</pallas_src>

<mosaic_0001>
module attributes {stable_mosaic.version = 11 : i64} {
  func.func @_q_net_kernel(%arg0: i32, %arg1: memref<8x16xf32, #tpu.memory_space<vmem>>, %arg2: memref<16x32xf32, #tpu.memory_space<vmem>>, %arg3: memref<1x32xf32, #tpu.memory_space<vmem>>, %arg4: memref<32x4xf32, #tpu.memory_space<vmem>>, %arg5: memref<1x4xf32, #tpu.memory_space<vmem>>, %arg6: memref<8x4xf32, #tpu.memory_space<vmem>>) attributes {dimension_semantics = [#tpu.dimension_semantics<parallel>], iteration_bounds = array<i64: 1>, scalar_prefetch = 0 : i64, scratch_operands = 0 : i64, tpu.core_type = #tpu.core_type<tc>, window_params = [{transform_indices = @transform_0, window_bounds = array<i64: 8, 16>}, {pipeline_mode = #tpu.pipeline_mode<synchronous>, transform_indices = @transform_1, window_bounds = array<i64: 16, 32>}, {pipeline_mode = #tpu.pipeline_mode<synchronous>, transform_indices = @transform_2, window_bounds = array<i64: 1, 32>}, {pipeline_mode = #tpu.pipeline_mode<synchronous>, transform_indices = @transform_3, window_bounds = array<i64: 32, 4>}, {pipeline_mode = #tpu.pipeline_mode<synchronous>, transform_indices = @transform_4, window_bounds = array<i64: 1, 4>}, {transform_indices = @transform_5, window_bounds = array<i64: 8, 4>}]} {
    %c0 = arith.constant 0 : index
    %c0_0 = arith.constant 0 : index
    %0 = vector.load %arg1[%c0, %c0_0] : memref<8x16xf32, #tpu.memory_space<vmem>>, vector<8x16xf32>
    %c0_1 = arith.constant 0 : index
    %c0_2 = arith.constant 0 : index
    %1 = vector.load %arg2[%c0_1, %c0_2] : memref<16x32xf32, #tpu.memory_space<vmem>>, vector<16x32xf32>
    %cst = arith.constant dense<0.000000e+00> : vector<8x32xf32>
    %2 = tpu.matmul %0, %1, %cst {dimension_numbers = #tpu.dot_dimension_numbers<[1], [0], [0], [1], [0, 0, 1, 1], [], []>} : vector<8x16xf32>, vector<16x32xf32>, vector<8x32xf32> -> vector<8x32xf32>
    %c0_3 = arith.constant 0 : index
    %c0_4 = arith.constant 0 : index
    %3 = vector.load %arg3[%c0_3, %c0_4] : memref<1x32xf32, #tpu.memory_space<vmem>>, vector<1x32xf32>
    %4 = vector.broadcast %3 : vector<1x32xf32> to vector<8x32xf32>
    %5 = arith.addf %2, %4 : vector<8x32xf32>
    %cst_5 = arith.constant 0.000000e+00 : f32
    %6 = vector.broadcast %cst_5 : f32 to vector<8x32xf32>
    %7 = arith.maximumf %5, %6 : vector<8x32xf32>
    %c0_6 = arith.constant 0 : index
    %c0_7 = arith.constant 0 : index
    %8 = vector.load %arg4[%c0_6, %c0_7] : memref<32x4xf32, #tpu.memory_space<vmem>>, vector<32x4xf32>
    %cst_8 = arith.constant dense<0.000000e+00> : vector<8x4xf32>
    %9 = tpu.matmul %7, %8, %cst_8 {dimension_numbers = #tpu.dot_dimension_numbers<[1], [0], [0], [1], [0, 0, 1, 1], [], []>} : vector<8x32xf32>, vector<32x4xf32>, vector<8x4xf32> -> vector<8x4xf32>
    %c0_9 = arith.constant 0 : index
    %c0_10 = arith.constant 0 : index
    %10 = vector.load %arg5[%c0_9, %c0_10] : memref<1x4xf32, #tpu.memory_space<vmem>>, vector<1x4xf32>
    %11 = vector.broadcast %10 : vector<1x4xf32> to vector<8x4xf32>
    %12 = arith.addf %9, %11 : vector<8x4xf32>
    %cst_11 = arith.constant 0.000000e+00 : f32
    %13 = vector.broadcast %cst_11 : f32 to vector<8x4xf32>
    %14 = arith.maximumf %12, %13 : vector<8x4xf32>
    %c0_12 = arith.constant 0 : index
    %c0_13 = arith.constant 0 : index
    %15 = vector.load %arg6[%c0_12, %c0_13] : memref<8x4xf32, #tpu.memory_space<vmem>>, vector<8x4xf32>
    tpu.vector_store %arg6[%c0_12, %c0_13], %14 {strides = array<i32>} : memref<8x4xf32, #tpu.memory_space<vmem>>, vector<8x4xf32>,
    return
  }
  func.func @transform_0(%arg0: i32) -> (i32, i32) {
    %c0_i32 = arith.constant 0 : i32
    %c0_i32_0 = arith.constant 0 : i32
    return %arg0, %c0_i32 : i32, i32
  }
  func.func @transform_1(%arg0: i32) -> (i32, i32) {
    %c0_i32 = arith.constant 0 : i32
    %c0_i32_0 = arith.constant 0 : i32
    %c0_i32_1 = arith.constant 0 : i32
    return %c0_i32, %c0_i32_0 : i32, i32
  }
  func.func @transform_2(%arg0: i32) -> (i32, i32) {
    %c0_i32 = arith.constant 0 : i32
    %c0_i32_0 = arith.constant 0 : i32
    %c0_i32_1 = arith.constant 0 : i32
    return %c0_i32, %c0_i32_0 : i32, i32
  }
  func.func @transform_3(%arg0: i32) -> (i32, i32) {
    %c0_i32 = arith.constant 0 : i32
    %c0_i32_0 = arith.constant 0 : i32
    %c0_i32_1 = arith.constant 0 : i32
    return %c0_i32, %c0_i32_0 : i32, i32
  }
  func.func @transform_4(%arg0: i32) -> (i32, i32) {
    %c0_i32 = arith.constant 0 : i32
    %c0_i32_0 = arith.constant 0 : i32
    %c0_i32_1 = arith.constant 0 : i32
    return %c0_i32, %c0_i32_0 : i32, i32
  }
  func.func @transform_5(%arg0: i32) -> (i32, i32) {
    %c0_i32 = arith.constant 0 : i32
    %c0_i32_0 = arith.constant 0 : i32
    return %arg0, %c0_i32 : i32, i32
  }
}

</mosaic_0001>

<bundles_post_ra>
// kernel: tpu_custom_call.1
= control target key start
LH: loop header
LB: loop body
LE: loop exit
PB: predicated region body
PF: predicated region fallthrough
CT: control target
= control target key end

     0   :  { %v229_v0 = vmov 0.0   ;;  %vm230_vm0 = vmmov 0   ;;  %vm30_vm1 = vcmask 130048   ;;  %vm116_vm2 = vcmask 261120   ;;  %s291_s1 = inlined_call_operand.vmem [shape: f32[16,32], index: 1, kind: input, shape index: {}]   ;;  %s292_s0 = inlined_call_operand.vmem [shape: f32[8,16], index: 0, kind: input, shape index: {}]   ;;  %s293_s3 = inlined_call_operand.vmem [shape: f32[32,4], index: 3, kind: input, shape index: {}]   ;;  %s294_s2 = inlined_call_operand.vmem [shape: f32[1,32], index: 2, kind: input, shape index: {}]   ;;  %s295_s4 = inlined_call_operand.vmem [shape: f32[1,4], index: 4, kind: input, shape index: {}]   ;;  %s296_s5 = inlined_call_operand.vmem [shape: f32[8,4], index: 5, kind: output, shape index: {}]  }
   0x1   :  { %209 = vmatprep.subr.mxu0 %v229_v0  ;;  %v22_v1 = vld [vmem:[%s291_s1 + $0x8] sm:$0xff]  ;;  %v21_v2 = vld [vmem:[%s291_s1] sm:$0xff]  ;;  %213 = vmatprep.mubr.msk.f32.mxu0 %vm230_vm0, %v229_v0  ;;  %v108_v4 = vld [vmem:[%s293_s3 + $0x18] sm:$0xff]  ;;  %vm191_vm3 = vcmask 31744  }
   0x2   :  { %210 = vmatpush3.msra.mxu0 %v22_v1  ;;  %v20_v3 = vld [vmem:[%s292_s0] sm:$0xff]  ;;  %216 = vmatprep.subr.mxu1 %v229_v0  ;;  %v107_v5 = vld [vmem:[%s293_s3 + $0x10] sm:$0xff]  ;;  %v106_v6 = vld [vmem:[%s293_s3 + $0x8] sm:$0xff] }
   0x3   :  { %211 = vmatprep.subr.mxu0 %v229_v0  ;;  %217 = vmatpush3.msra.mxu1 %v108_v4  ;;  %v105_v7 = vld [vmem:[%s293_s3] sm:$0xff] }
   0x4   :  { %212 = vmatpush3.msra.mxu0 %v21_v2  ;;  %218 = vmatprep.subr.mxu1 %v229_v0  ;;  %v197_v8 = vld [vmem:[%s294_s2] ss:$0 sm:$0xff] }
   0x5   :  { %214 = vmatmul.mubr.msk.f32.vlgmr.msra.gmra.mxu0 %vm30_vm1, %v20_v3  ;;  %224 = vmatprep.mubr.msk.f32.mxu1 %vm230_vm0, %v229_v0  ;;  %v199_v13 = vld [vmem:[%s295_s4] ss:$0 sm:$0xff] }
   0x6   :  { %219 = vmatpush3.msra.mxu1 %v107_v5 }
   0x7   :  { %220 = vmatprep.subr.mxu1 %v229_v0 }
   0x8   :  { %221 = vmatpush3.msra.mxu1 %v106_v6 }
   0x9   :  { %222 = vmatprep.subr.mxu1 %v229_v0 }
   0xa   :  { %223 = vmatpush3.msra.mxu1 %v105_v7 }
  0xc5   :  { %v100_v9 = vpop.f32.mrf.mxu0 }
  0xc6   :  { %v101_v10 = vadd.f32 %v197_v8, %v100_v9 }
  0xc7   :  { %v215_v11 = vpop.f32.mrf.mxu0 }
  0xc8   :  { %v104_v12 = vmax.f32 %v101_v10, 0.0 }
  0xca   :  { %225 = vmatmul.mubr.msk.f32.vlgmr.msra.gmra.mxu1 %vm116_vm2, %v104_v12 }
 0x18a   :  { %v186_v14 = vpop.f32.mrf.mxu1 }
 0x18b   :  { %v187_v15 = vadd.f32 %v199_v13, %v186_v14 }
 0x18c   :  { %v226_v16 = vpop.f32.mrf.mxu1 }
 0x18d   :  { %v190_v17 = vmax.f32 %v187_v15, 0.0 }
 0x18f   :  { %192 = vst.msk [vmem:[%s296_s5] sm:$0xff] %vm191_vm3, %v190_v17 }

</bundles_post_ra>
